<compile_context>
chip_gen: v6e
topology: v6e:2x2x1
jax: 0.10.0
libtpu: 0.0.40
codegen_flags: <defaults>
</compile_context>

<pallas_src>
import functools

import jax
import jax.numpy as jnp
from jax.experimental import pallas as pl
from jax.experimental.pallas import tpu as pltpu


def _largest_divisor(n, cap, quantum=1):
    """Largest divisor of n that is <= cap and a multiple of quantum, or None."""
    cap = min(cap, n)
    for d in range(cap, 0, -1):
        if n % d == 0 and d % quantum == 0:
            return d
    return None


def _avg_pool_fuser_kernel(x_ref, o_ref, acc_ref, *, inv_n):
    # Grid: (batch tiles, D tiles, N tiles);  N (faces) is the reduction axis.
    ni = pl.program_id(2)

    @pl.when(ni == 0)
    def _init():
        acc_ref[...] = jnp.zeros_like(acc_ref)

    # Partial sum over the faces axis of this (tb, tn, td) block, accumulating
    # in f32 without materializing an upcast copy of the tile.
    acc_ref[...] += jnp.sum(x_ref[...], axis=1, dtype=jnp.float32)

    @pl.when(ni == pl.num_programs(2) - 1)
    def _finalize():
        o_ref[...] = (acc_ref[...] * inv_n).astype(o_ref.dtype)


def avg_pool_fuser(batch_face_emb: jax.Array,
                   *,
                   tb: int | None = None,
                   td: int | None = None,
                   tn: int | None = None,
                   target_block_bytes: int = 4 << 20) -> jax.Array:
    """Pallas equivalent of AvgPoolFuser.forward (mean over dim=1)."""
    B, N, D = batch_face_emb.shape
    itemsize = jnp.dtype(batch_face_emb.dtype).itemsize

    # --- D tile (lane axis): big multiple of 128 that divides D, else full D.
    if td is None:
        td = _largest_divisor(D, cap=2048, quantum=128) or D

    # --- B tile (output sublane axis): multiple of 8 that divides B, else full B.
    if tb is None:
        tb_cap = max(1, target_block_bytes // max(1, N * td * itemsize))
        tb = _largest_divisor(B, cap=tb_cap, quantum=8) or B

    # --- N tile (reduction axis): keep the input block near the budget.
    if tn is None:
        tn_cap = max(1, target_block_bytes // max(1, tb * td * itemsize))
        if N <= tn_cap:
            tn = N
        else:
            tn = _largest_divisor(N, cap=tn_cap, quantum=8) or N

    assert B % tb == 0 and N % tn == 0 and D % td == 0, (tb, tn, td, (B, N, D))

    grid = (B // tb, D // td, N // tn)  # reduction axis last

    in_block_bytes = tb * tn * td * itemsize
    out_block_bytes = tb * td * itemsize
    acc_bytes = tb * td * 4
    # BlockSpec double-buffers each input/output block; add headroom.
    vmem_limit = int(max(2 * in_block_bytes + 2 * out_block_bytes + acc_bytes
                         + (2 << 20), 4 << 20))

    kernel = functools.partial(_avg_pool_fuser_kernel, inv_n=1.0 / N)

    return pl.pallas_call(
        kernel,
        out_shape=jax.ShapeDtypeStruct((B, D), batch_face_emb.dtype),
        grid_spec=pltpu.PrefetchScalarGridSpec(
            num_scalar_prefetch=0,
            grid=grid,
            in_specs=[pl.BlockSpec((tb, tn, td),
                                   lambda bi, di, ni: (bi, ni, di))],
            out_specs=pl.BlockSpec((tb, td), lambda bi, di, ni: (bi, di)),
            scratch_shapes=[pltpu.VMEM((tb, td), jnp.float32)],
        ),
        compiler_params=pltpu.CompilerParams(
            dimension_semantics=("parallel", "parallel", "arbitrary"),
            vmem_limit_bytes=vmem_limit,
        ),
    )(batch_face_emb)


if __name__ == "__main__":
    key = jax.random.PRNGKey(0)

    # Case 1: the module's nominal small shape (B=2 items, N=8 faces, D=128).
    x1 = jax.random.normal(key, (2, 8, 128), dtype=jnp.float32)
    out1 = jax.block_until_ready(avg_pool_fuser(x1))
    ref1 = jnp.mean(x1, axis=1)
    assert out1.shape == ref1.shape, (out1.shape, ref1.shape)
    assert jnp.allclose(out1, ref1, atol=1e-5, rtol=1e-5)

    # Case 2: exercise the tiled path explicitly (multi-tile B/D and a
    # multi-step N reduction with the f32 accumulator).
    k2, k3 = jax.random.split(key)
    x2 = jax.random.normal(k2, (16, 64, 256), dtype=jnp.float32)
    out2 = jax.block_until_ready(avg_pool_fuser(x2, tb=8, td=128, tn=16))
    ref2 = jnp.mean(x2, axis=1)
    assert jnp.allclose(out2, ref2, atol=1e-5, rtol=1e-5)

    # Case 3: bf16 input, f32 accumulation inside the kernel.
    x3 = jax.random.normal(k3, (8, 16, 256), dtype=jnp.bfloat16)
    out3 = jax.block_until_ready(avg_pool_fuser(x3))
    ref3 = jnp.mean(x3.astype(jnp.float32), axis=1).astype(jnp.bfloat16)
    assert jnp.allclose(out3.astype(jnp.float32), ref3.astype(jnp.float32),
                        atol=1e-2, rtol=1e-2)

    print("KERNEL_OK")
</pallas_src>

<mosaic_0001>
module attributes {stable_mosaic.version = 11 : i64} {
  func.func @_avg_pool_fuser_kernel(%arg0: i32, %arg1: i32, %arg2: i32, %arg3: memref<2x8x128xf32, #tpu.memory_space<vmem>>, %arg4: memref<2x128xf32, #tpu.memory_space<vmem>>, %arg5: memref<2x128xf32, #tpu.memory_space<vmem>>) attributes {dimension_semantics = [#tpu.dimension_semantics<parallel>, #tpu.dimension_semantics<parallel>, #tpu.dimension_semantics<arbitrary>], iteration_bounds = array<i64: 1, 1, 1>, scalar_prefetch = 0 : i64, scratch_operands = 1 : i64, tpu.core_type = #tpu.core_type<tc>, window_params = [{transform_indices = @transform_0, window_bounds = array<i64: 2, 8, 128>}, {transform_indices = @transform_1, window_bounds = array<i64: 2, 128>}]} {
    %c0_i32 = arith.constant 0 : i32
    %0 = arith.cmpi eq, %arg2, %c0_i32 : i32
    %1 = arith.extui %0 : i1 to i32
    %c0_i32_0 = arith.constant 0 : i32
    %2 = arith.cmpi ne, %1, %c0_i32_0 : i32
    scf.if %2 {
      %cst_9 = arith.constant 0.000000e+00 : f32
      %11 = vector.broadcast %cst_9 : f32 to vector<2x128xf32>
      %c0_10 = arith.constant 0 : index
      %c0_11 = arith.constant 0 : index
      %12 = vector.load %arg5[%c0_10, %c0_11] : memref<2x128xf32, #tpu.memory_space<vmem>>, vector<2x128xf32>
      tpu.vector_store %arg5[%c0_10, %c0_11], %11 {strides = array<i32>} : memref<2x128xf32, #tpu.memory_space<vmem>>, vector<2x128xf32>,
    } else {
    }
    %c0 = arith.constant 0 : index
    %c0_1 = arith.constant 0 : index
    %3 = vector.load %arg5[%c0, %c0_1] : memref<2x128xf32, #tpu.memory_space<vmem>>, vector<2x128xf32>
    %c0_2 = arith.constant 0 : index
    %c0_3 = arith.constant 0 : index
    %c0_4 = arith.constant 0 : index
    %4 = vector.load %arg3[%c0_2, %c0_3, %c0_4] : memref<2x8x128xf32, #tpu.memory_space<vmem>>, vector<2x8x128xf32>
    %cst = arith.constant dense<0.000000e+00> : vector<2x128xf32>
    %5 = vector.multi_reduction <add>, %4, %cst [1] : vector<2x8x128xf32> to vector<2x128xf32>
    %6 = arith.addf %3, %5 : vector<2x128xf32>
    %c0_5 = arith.constant 0 : index
    %c0_6 = arith.constant 0 : index
    %7 = vector.load %arg5[%c0_5, %c0_6] : memref<2x128xf32, #tpu.memory_space<vmem>>, vector<2x128xf32>
    tpu.vector_store %arg5[%c0_5, %c0_6], %6 {strides = array<i32>} : memref<2x128xf32, #tpu.memory_space<vmem>>, vector<2x128xf32>,
    %c0_i32_7 = arith.constant 0 : i32
    %8 = arith.cmpi eq, %arg2, %c0_i32_7 : i32
    %9 = arith.extui %8 : i1 to i32
    %c0_i32_8 = arith.constant 0 : i32
    %10 = arith.cmpi ne, %9, %c0_i32_8 : i32
    scf.if %10 {
      %c0_9 = arith.constant 0 : index
      %c0_10 = arith.constant 0 : index
      %11 = vector.load %arg5[%c0_9, %c0_10] : memref<2x128xf32, #tpu.memory_space<vmem>>, vector<2x128xf32>
      %cst_11 = arith.constant 1.250000e-01 : f32
      %12 = vector.broadcast %cst_11 : f32 to vector<2x128xf32>
      %13 = arith.mulf %11, %12 : vector<2x128xf32>
      %c0_12 = arith.constant 0 : index
      %c0_13 = arith.constant 0 : index
      %14 = vector.load %arg4[%c0_12, %c0_13] : memref<2x128xf32, #tpu.memory_space<vmem>>, vector<2x128xf32>
      tpu.vector_store %arg4[%c0_12, %c0_13], %13 {strides = array<i32>} : memref<2x128xf32, #tpu.memory_space<vmem>>, vector<2x128xf32>,
    } else {
    }
    return
  }
  func.func @transform_0(%arg0: i32, %arg1: i32, %arg2: i32) -> (i32, i32, i32) {
    %c0_i32 = arith.constant 0 : i32
    return %arg0, %arg2, %arg1 : i32, i32, i32
  }
  func.func @transform_1(%arg0: i32, %arg1: i32, %arg2: i32) -> (i32, i32) {
    %c0_i32 = arith.constant 0 : i32
    return %arg0, %arg1 : i32, i32
  }
}

</mosaic_0001>

<bundles_post_ra>
// kernel: tpu_custom_call.1
= control target key start
LH: loop header
LB: loop body
LE: loop exit
PB: predicated region body
PF: predicated region fallthrough
CT: control target
= control target key end

     0   :  { %6 = vsyncpa [#allocation4], 0  ;;  %s141_s0 = inlined_call_operand.hbm [shape: f32[2,8,128], index: 0, kind: input, shape index: {}]   ;;  %s142_s1 = inlined_call_operand.hbm [shape: f32[2,128], index: 1, kind: output, shape index: {}]  }
   0x1   :  { %7 = vsyncpa [#allocation5], 0  ;;  %s120_s6 = smov [#allocation3]  }
   0x2   :  { %s13_s7 = sshll.u32 %s120_s6, 4  ;;  %s14_s7 = int_to_ptr.vmem [resolvable:$true] %s13_s7 }
   0x3   :  { %s84_s8 = scalar_lea.vmem %s14_s7, 256  ;;  %p89_p1 = scmp.lt.s32.totalorder %s14_s7, %s14_s7 }
   0x4   :  { %p85_p0 = scmp.ne.s32.totalorder %s14_s7, %s84_s8  ;;  %p90_p2 = scmp.lt.s32.totalorder %s84_s8, %s84_s8 }
   0x6   :  { %p91_p3 = por %p90_p2, %p89_p1 }
   0x8   :  { %p92_p4 = pnand %p91_p3, %p85_p0 }
   0xa   :  { %95 = shalt.err (!%p92_p4)
}
   0xb   :  { %s121_s9 = smov 128   ;;  %s122_s10 = smov 8  }
   0xc   :  { %19 = dma.hbm_to_vmem [thread:$0]  %s141_s0, 256, %s14_s7, [#allocation4], %s121_s9, %s121_s9, %s122_s10  }
   0xd   :  { %116 = dma.done.wait [#allocation4], 256  }
   0xe   :  { %117 = vsyncadd [#allocation4], 4294967040  ;;  %v123_v0 = vmov 0.0   ;;  %v29_v1 = vld [vmem:[#allocation3] sm:$0xff]  ;;  %v30_v2 = vld [vmem:[#allocation3 + $0x8] sm:$0xff]  ;;  %vm45_vm0 = vcmask 1041409  }
   0xf   :  { %27 = vst [vmem:[#allocation2] sm:$0x3] %v123_v0  ;;  %v31_v3 = vrot.slane %v29_v1, 4  ;;  %v37_v4 = vrot.slane %v30_v2, 4  ;;  %s124_s0 = smov [#allocation6]  }
  0x10   :  { %s62_s13 = sshll.u32 %s124_s0, 4  ;;  %s63_s13 = int_to_ptr.vmem [resolvable:$true] %s62_s13 }
  0x11   :  { %v32_v5 = vadd.f32 %v31_v3, %v29_v1  ;;  %v38_v6 = vadd.f32 %v37_v4, %v30_v2  ;;  %s96_s14 = scalar_lea.vmem %s63_s13, 32  ;;  %p101_p6 = scmp.lt.s32.totalorder %s63_s13, %s63_s13 }
  0x12   :  { %p97_p5 = scmp.ne.s32.totalorder %s63_s13, %s96_s14  ;;  %p102_p7 = scmp.lt.s32.totalorder %s96_s14, %s96_s14 }
  0x13   :  { %v33_v7 = vrot.slane %v32_v5, 2  ;;  %v39_v8 = vrot.slane %v38_v6, 2 }
  0x14   :  { %p103_p8 = por %p102_p7, %p101_p6 }
  0x15   :  { %v34_v9 = vadd.f32 %v33_v7, %v32_v5  ;;  %v40_v10 = vadd.f32 %v39_v8, %v38_v6 }
  0x16   :  { %v28_v13 = vld [vmem:[#allocation2] sm:$0x3]  ;;  %p104_p9 = pnand %p103_p8, %p97_p5 }
  0x17   :  { %v35_v11 = vrot.slane %v34_v9, 1  ;;  %v41_v12 = vrot.slane %v40_v10, 1 }
  0x19   :  { %v36_v14 = vadd.f32 %v35_v11, %v34_v9  ;;  %v42_v15 = vadd.f32 %v41_v12, %v40_v10 }
  0x1b   :  { %v46_v16 = vsel %vm45_vm0, %v42_v15, %v36_v14 }
  0x1c   :  { %v48_v17 = vadd.f32 %v46_v16, %v28_v13 }
  0x1e   :  { %49 = vst [vmem:[#allocation2] sm:$0x3] %v48_v17 }
  0x25   :  { %v53_v18 = vld [vmem:[#allocation2] sm:$0x3] }
  0x26   :  { %v54_v19 = vmul.f32 0.125, %v53_v18 }
  0x28   :  { %55 = vst [vmem:[#allocation6] sm:$0x3] %v54_v19 }
  0x29   :  { %107 = shalt.err (!%p104_p9)
}
  0x2a   :  { %65 = dma.vmem_to_hbm [thread:$0]  %s63_s13, 32, %s142_s1, [#allocation5]  }
  0x2b   :  { %118 = dma.done.wait [#allocation5], 32  }
  0x2c   :  { %119 = vsyncadd [#allocation5], 4294967264 }
  0x2d   :  { %69 = vsyncpa [#allocation4], 1 }
  0x2e   :  { %70 = vsyncpa [#allocation5], 1 }

</bundles_post_ra>
